<compile_context>
chip_gen: v7x
topology: tpu7x:2x2x1
jax: 0.10.0
libtpu: 0.0.40
codegen_flags: <defaults>
</compile_context>

<pallas_src>
import functools

import jax
import jax.numpy as jnp
from jax.experimental import pallas as pl
from jax.experimental.pallas import tpu as pltpu


def _ragan_kernel(xr_ref, xf_ref, out_ref, *, n_valid, is_dis):
    # Full-array block, no padding: every element is valid.
    xr = xr_ref[...].astype(jnp.float32)
    xf = xf_ref[...].astype(jnp.float32)

    inv_n = 1.0 / float(n_valid)

    mean_real = jnp.sum(xr) * inv_n
    mean_fake = jnp.sum(xf) * inv_n

    d1 = xr - mean_fake   # Dra(x_real, x_fake)
    d2 = xf - mean_real   # Dra(x_fake, x_real)

    # Numerically-stable BCEWithLogits core:
    #   target=1: softplus(-z);  target=0: softplus(z)
    def softplus(z):
        return jnp.maximum(z, 0.0) + jnp.log1p(jnp.exp(-jnp.abs(z)))

    # is_dis resolved at trace time -> no per-element sign multiplies.
    if is_dis:
        per_elem = softplus(-d1) + softplus(d2)   # BCE(d1, 1) + BCE(d2, 0)
    else:
        per_elem = softplus(d1) + softplus(-d2)   # BCE(d1, 0) + BCE(d2, 1)

    # Both 0.5*mean reductions folded into one scaled sum; scalar lands in SMEM.
    out_ref[0, 0] = jnp.sum(per_elem) * (0.5 * inv_n)


def ragan_loss(x_real, x_fake, loss_type):
    assert loss_type in ("adv", "dis")
    assert x_real.shape == x_fake.shape, "real/fake logits must match in shape"
    n = x_real.size  # correct divisor for any logit shape (B,1), (B,C), ...

    # Pass the logits straight through — no pad, no astype, no lane-dense HBM
    # copy. At the module's actual shapes ((BATCH_SIZE, 1) discriminator
    # logits) the op is pure launch/DMA latency, so eliminating the extra
    # wrapper fusions is the dominant win.
    if x_real.ndim == 2:
        xr, xf = x_real, x_fake
    elif x_real.ndim == 1:
        xr, xf = x_real.reshape(1, -1), x_fake.reshape(1, -1)
    else:
        # Contiguous flatten of trailing dims (no padding, no data reformat
        # beyond a metadata-level reshape).
        xr = x_real.reshape(x_real.shape[0], -1)
        xf = x_fake.reshape(x_fake.shape[0], -1)

    kernel = functools.partial(
        _ragan_kernel, n_valid=n, is_dis=(loss_type == "dis"))

    itemsize = jnp.dtype(xr.dtype).itemsize
    cost = pl.CostEstimate(
        flops=10 * n,              # 2 means + 2 Dra + softplus adds/maxes + final sum
        transcendentals=4 * n,     # 2x exp + 2x log1p
        bytes_accessed=2 * n * itemsize + 4,
    )

    # TODO(synk): for very large patch-GAN logits (B*H*W in the millions),
    # switch to an R-tiled two-pass grid (mean pass + BCE pass, SMEM partials,
    # megacore split on v7x); at the module's (BATCH_SIZE, 1) shapes the
    # single-block design is strictly better (no per-step pipeline overhead).
    out = pl.pallas_call(
        kernel,
        out_shape=jax.ShapeDtypeStruct((1, 1), jnp.float32),
        in_specs=[
            pl.BlockSpec(xr.shape, lambda: (0, 0)),
            pl.BlockSpec(xf.shape, lambda: (0, 0)),
        ],
        # Scalar reduction result belongs in SMEM, not a masked VMEM tile.
        out_specs=pl.BlockSpec(memory_space=pltpu.MemorySpace.SMEM),
        cost_estimate=cost,
    )(xr, xf)
    # Return the (1,1) array; callers squeeze/index outside the kernel.
    return out


def ragan_loss_ref(x_real, x_fake, loss_type):
    # Pure-JAX reference, mirrors the PyTorch module exactly.
    def bce_with_logits(z, y):
        return jnp.mean(jnp.maximum(z, 0.0) - z * y + jnp.log1p(jnp.exp(-jnp.abs(z))))

    d1 = x_real - jnp.mean(x_fake)
    d2 = x_fake - jnp.mean(x_real)
    ones = jnp.ones_like(x_real)
    zeros = jnp.zeros_like(x_real)
    if loss_type == "dis":
        return (bce_with_logits(d1, ones) + bce_with_logits(d2, zeros)) / 2
    else:
        return (bce_with_logits(d1, zeros) + bce_with_logits(d2, ones)) / 2


if __name__ == "__main__":
    # config.BATCH_SIZE = 8 (small synthetic shape); discriminator logits (B, 1).
    B = 8
    key = jax.random.PRNGKey(0)
    k1, k2 = jax.random.split(key)
    x_real = jax.random.normal(k1, (B, 1), dtype=jnp.float32)
    x_fake = jax.random.normal(k2, (B, 1), dtype=jnp.float32)

    ok = True
    for loss_type in ("dis", "adv"):
        out = ragan_loss(x_real, x_fake, loss_type)
        out = jax.block_until_ready(out)
        ref = ragan_loss_ref(x_real, x_fake, loss_type)
        if not jnp.allclose(out[0, 0], ref, atol=1e-5, rtol=1e-5):
            ok = False

    if ok:
        print("KERNEL_OK")
</pallas_src>

<mosaic_0001>
module attributes {stable_mosaic.version = 11 : i64} {
  func.func @_ragan_kernel(%arg0: memref<8x1xf32, #tpu.memory_space<vmem>>, %arg1: memref<8x1xf32, #tpu.memory_space<vmem>>, %arg2: memref<1x1xf32, #tpu.memory_space<smem>>) attributes {dimension_semantics = [], scalar_prefetch = 0 : i64, scratch_operands = 0 : i64, tpu.core_type = #tpu.core_type<tc>} {
    %c0 = arith.constant 0 : index
    %c0_0 = arith.constant 0 : index
    %0 = vector.load %arg0[%c0, %c0_0] : memref<8x1xf32, #tpu.memory_space<vmem>>, vector<8x1xf32>
    %c0_1 = arith.constant 0 : index
    %c0_2 = arith.constant 0 : index
    %1 = vector.load %arg1[%c0_1, %c0_2] : memref<8x1xf32, #tpu.memory_space<vmem>>, vector<8x1xf32>
    %2 = vector.shape_cast %0 : vector<8x1xf32> to vector<1x8x1xf32>
    %cst = arith.constant dense<0.000000e+00> : vector<1xf32>
    %3 = vector.multi_reduction <add>, %2, %cst [1, 2] : vector<1x8x1xf32> to vector<1xf32>
    %4 = vector.shape_cast %3 : vector<1xf32> to vector<1x1x1xf32>
    %5 = vector.extract %4[0, 0, 0] : f32 from vector<1x1x1xf32>
    %cst_3 = arith.constant 1.250000e-01 : f32
    %6 = arith.mulf %5, %cst_3 : f32
    %7 = vector.shape_cast %1 : vector<8x1xf32> to vector<1x8x1xf32>
    %cst_4 = arith.constant dense<0.000000e+00> : vector<1xf32>
    %8 = vector.multi_reduction <add>, %7, %cst_4 [1, 2] : vector<1x8x1xf32> to vector<1xf32>
    %9 = vector.shape_cast %8 : vector<1xf32> to vector<1x1x1xf32>
    %10 = vector.extract %9[0, 0, 0] : f32 from vector<1x1x1xf32>
    %cst_5 = arith.constant 1.250000e-01 : f32
    %11 = arith.mulf %10, %cst_5 : f32
    %12 = vector.broadcast %11 : f32 to vector<8x1xf32>
    %13 = arith.subf %0, %12 : vector<8x1xf32>
    %14 = vector.broadcast %6 : f32 to vector<8x1xf32>
    %15 = arith.subf %1, %14 : vector<8x1xf32>
    %cst_6 = arith.constant 0.000000e+00 : f32
    %16 = vector.broadcast %cst_6 : f32 to vector<8x1xf32>
    %17 = arith.subf %16, %13 : vector<8x1xf32>
    %cst_7 = arith.constant 0.000000e+00 : f32
    %18 = vector.broadcast %cst_7 : f32 to vector<8x1xf32>
    %19 = arith.maximumf %17, %18 : vector<8x1xf32>
    %20 = math.absf %17 : vector<8x1xf32>
    %cst_8 = arith.constant 0.000000e+00 : f32
    %21 = vector.broadcast %cst_8 : f32 to vector<8x1xf32>
    %22 = arith.subf %21, %20 : vector<8x1xf32>
    %23 = math.exp %22 : vector<8x1xf32>
    %24 = math.log1p %23 : vector<8x1xf32>
    %25 = arith.addf %19, %24 : vector<8x1xf32>
    %cst_9 = arith.constant 0.000000e+00 : f32
    %26 = vector.broadcast %cst_9 : f32 to vector<8x1xf32>
    %27 = arith.maximumf %15, %26 : vector<8x1xf32>
    %28 = math.absf %15 : vector<8x1xf32>
    %cst_10 = arith.constant 0.000000e+00 : f32
    %29 = vector.broadcast %cst_10 : f32 to vector<8x1xf32>
    %30 = arith.subf %29, %28 : vector<8x1xf32>
    %31 = math.exp %30 : vector<8x1xf32>
    %32 = math.log1p %31 : vector<8x1xf32>
    %33 = arith.addf %27, %32 : vector<8x1xf32>
    %34 = arith.addf %25, %33 : vector<8x1xf32>
    %35 = vector.shape_cast %34 : vector<8x1xf32> to vector<1x8x1xf32>
    %cst_11 = arith.constant dense<0.000000e+00> : vector<1xf32>
    %36 = vector.multi_reduction <add>, %35, %cst_11 [1, 2] : vector<1x8x1xf32> to vector<1xf32>
    %37 = vector.shape_cast %36 : vector<1xf32> to vector<1x1x1xf32>
    %38 = vector.extract %37[0, 0, 0] : f32 from vector<1x1x1xf32>
    %cst_12 = arith.constant 6.250000e-02 : f32
    %39 = arith.mulf %38, %cst_12 : f32
    %c0_13 = arith.constant 0 : index
    %c0_14 = arith.constant 0 : index
    %40 = memref.load %arg2[%c0_13, %c0_14] : memref<1x1xf32, #tpu.memory_space<smem>>
    memref.store %39, %arg2[%c0_13, %c0_14] : memref<1x1xf32, #tpu.memory_space<smem>>
    return
  }
}

</mosaic_0001>

<bundles_post_ra>
// kernel: tpu_custom_call.1
= control target key start
LH: loop header
LB: loop body
LE: loop exit
PB: predicated region body
PF: predicated region fallthrough
CT: control target
= control target key end

     0   :  { %vm14_vm0 = vcmask 7168   ;;  %s163_s0 = inlined_call_operand.vmem [shape: f32[8,1], index: 0, kind: input, shape index: {}]   ;;  %s164_s1 = inlined_call_operand.vmem [shape: f32[8,1], index: 1, kind: input, shape index: {}]   ;;  %s165_s2 = inlined_call_operand.hbm [shape: f32[1,1], index: 2, kind: output, shape index: {}]  }
   0x1   :  { %v12_v0 = vld [vmem:[%s163_s0] sm:$0xff] }
   0x2   :  { %v13_v1 = vld [vmem:[%s164_s1] sm:$0xff] }
   0x3   :  { %7 = vsyncpa [#allocation3], 0  ;;  %v15_v2 = vsel %vm14_vm0, %v12_v0, 0.0  ;;  %v26_v3 = vsel %vm14_vm0, %v13_v1, 0.0  ;;  %s114_s19 = scalar_lea.hbm %s165_s2, 16 }
   0x4   :  { %16 = vadd.xlane.f32.xlu0 %v15_v2  ;;  %p115_p0 = scmp.ne.s32.totalorder %s165_s2, %s114_s19  ;;  %p118_p1 = scmp.lt.u32.totalorder %s114_s19, %s165_s2 }
   0x6   :  { %p120_p2 = pnand %p118_p1, %p115_p0 }
   0x8   :  { %27 = vadd.xlane.f32.xlu0 %v26_v3 }
  0x91   :  { %v17_v4 = vpop.xlane.xlu0 %16 }
  0x92   :  { %v18_v5 = vrot.slane %v17_v4, 4 }
  0x94   :  { %v19_v6 = vadd.f32 %v18_v5, %v17_v4 }
  0x95   :  { %v28_v7 = vpop.xlane.xlu0 %27 }
  0x96   :  { %v20_v8 = vrot.slane %v19_v6, 2  ;;  %v29_v9 = vrot.slane %v28_v7, 4 }
  0x98   :  { %v30_v10 = vadd.f32 %v29_v9, %v28_v7  ;;  %v21_v11 = vadd.f32 %v20_v8, %v19_v6 }
  0x9a   :  { %v31_v12 = vrot.slane %v30_v10, 2  ;;  %v22_v13 = vrot.slane %v21_v11, 1 }
  0x9c   :  { %v32_v14 = vadd.f32 %v31_v12, %v30_v10  ;;  %v23_v15 = vadd.f32 %v22_v13, %v21_v11 }
  0x9e   :  { %99 = vpush %v23_v15  ;;  %v33_v16 = vrot.slane %v32_v14, 1 }
  0xa0   :  { %v34_v17 = vadd.f32 %v33_v16, %v32_v14 }
  0xa2   :  { %101 = vpush %v34_v17 }
  0xcf   :  { %s100_s0 = spop %99 }
  0xd0   :  { %s25_s1 = smul.f32 0.125, %s100_s0 }
  0xd2   :  { %v39_v18 = vstv %s25_s1 }
  0xd3   :  { %v40_v19 = vsub.f32 %v13_v1, %v39_v18  ;;  %s102_s13 = spop %101 }
  0xd4   :  { %s36_s14 = smul.f32 0.125, %s102_s13 }
  0xd5   :  { %v58_v20 = vand.u32 2147483647, %v40_v19  ;;  %v57_v46 = vmax.f32 %v40_v19, 0.0 }
  0xd6   :  { %v37_v21 = vstv %s36_s14 }
  0xd7   :  { %v59_v22 = vsub.f32 0.0, %v58_v20  ;;  %v38_v23 = vsub.f32 %v12_v0, %v37_v21 }
  0xd9   :  { %v60_v24 = vmul.f32 1.442695, %v59_v22  ;;  %v41_v25 = vsub.f32 0.0, %v38_v23 }
  0xdb   :  { %106 = vpow2.f32 %v60_v24  ;;  %v43_v26 = vand.u32 2147483647, %v41_v25  ;;  %v42_v47 = vmax.f32 %v41_v25, 0.0 }
  0xdd   :  { %v44_v27 = vsub.f32 0.0, %v43_v26 }
  0xdf   :  { %v45_v28 = vmul.f32 1.442695, %v44_v27 }
  0xe1   :  { %108 = vpow2.f32 %v45_v28 }
  0xe5   :  { %v107_v29 = vpop.eup %106 }
  0xe6   :  { %v62_v30 = vadd.f32 1.0, %v107_v29  ;;  %v65_v33 = vmul.f32 -0.5, %v107_v29  ;;  %v68_v37 = vand.u32 2147483647, %v107_v29 }
  0xe8   :  { %110 = vlog2.f32 %v62_v30  ;;  %v66_v36 = vadd.f32 1.0, %v65_v33  ;;  %vm69_vm1 = vcmp.lt.f32.partialorder %v68_v37, 0.0004427343 }
  0xea   :  { %v67_v41 = vmul.f32 %v107_v29, %v66_v36 }
  0xeb   :  { %v109_v31 = vpop.eup %108 }
  0xec   :  { %v47_v32 = vadd.f32 1.0, %v109_v31  ;;  %v50_v34 = vmul.f32 -0.5, %v109_v31  ;;  %v53_v40 = vand.u32 2147483647, %v109_v31 }
  0xee   :  { %112 = vlog2.f32 %v47_v32  ;;  %v51_v38 = vadd.f32 1.0, %v50_v34  ;;  %vm54_vm2 = vcmp.lt.f32.partialorder %v53_v40, 0.0004427343 }
  0xf0   :  { %v52_v44 = vmul.f32 %v109_v31, %v51_v38 }
  0xf2   :  { %v111_v35 = vpop.eup %110 }
  0xf3   :  { %v64_v39 = vmul.f32 0.6931472, %v111_v35 }
  0xf5   :  { %v70_v45 = vsel %vm69_vm1, %v67_v41, %v64_v39 }
  0xf6   :  { %v71_v50 = vadd.f32 %v70_v45, %v57_v46 }
  0xf8   :  { %v113_v42 = vpop.eup %112 }
  0xf9   :  { %v49_v43 = vmul.f32 0.6931472, %v113_v42 }
  0xfb   :  { %v55_v48 = vsel %vm54_vm2, %v52_v44, %v49_v43 }
  0xfc   :  { %v56_v49 = vadd.f32 %v55_v48, %v42_v47 }
  0xfe   :  { %v72_v51 = vadd.f32 %v71_v50, %v56_v49 }
 0x100   :  { %v73_v52 = vsel %vm14_vm0, %v72_v51, 0.0 }
 0x101   :  { %74 = vadd.xlane.f32.xlu1 %v73_v52 }
 0x18e   :  { %v75_v53 = vpop.xlane.xlu1 %74 }
 0x18f   :  { %v76_v54 = vrot.slane %v75_v53, 4 }
 0x191   :  { %v77_v55 = vadd.f32 %v76_v54, %v75_v53 }
 0x193   :  { %v78_v56 = vrot.slane %v77_v55, 2 }
 0x195   :  { %v79_v57 = vadd.f32 %v78_v56, %v77_v55 }
 0x197   :  { %v80_v58 = vrot.slane %v79_v57, 1 }
 0x199   :  { %v81_v59 = vadd.f32 %v80_v58, %v79_v57 }
 0x19b   :  { %103 = vpush %v81_v59 }
 0x1cc   :  { %s104_s15 = spop %103 }
 0x1cd   :  { %s83_s16 = smul.f32 0.0625, %s104_s15 }
 0x1cf   :  { %85 = sst [smem:[#allocation2]] %s83_s16 }
 0x1d0   :  { %123 = shalt.err (!%p120_p2)
}
 0x1d1   :  { %s126_s24 = smov [#allocation2]  }
 0x1d2   :  { %93 = dma.smem_to_hbm %s126_s24, 16, %s165_s2, [#allocation3]  }
 0x1d3   :  { %124 = dma.done.wait [#allocation3], 16  }
 0x1d4   :  { %125 = vsyncadd [#allocation3], 4294967280 }
 0x1d5   :  { %97 = sfence }
 0x1d6   :  { %98 = vsyncpa [#allocation3], 1 }

</bundles_post_ra>
